<compile_context>
chip_gen: v7x
topology: tpu7x:2x2x1
jax: 0.10.0
libtpu: 0.0.40
codegen_flags: <defaults>
</compile_context>

<pallas_src>
import functools

import jax
import jax.numpy as jnp
from jax.experimental import pallas as pl
from jax.experimental.pallas import tpu as pltpu


def _round_up(v: int, m: int) -> int:
    return (v + m - 1) // m * m


def _round_down(v: int, m: int) -> int:
    return v // m * m


# ----------------------------------------------------------------------------
# Single-pass kernel: one block = (tile_rows, H*W); each row is one (n, c) map.
# ----------------------------------------------------------------------------
def _adain_rows_kernel(x_ref, y_ref, o_ref, *, eps: float, hw: int):
    x = x_ref[...].astype(jnp.float32)
    y = y_ref[...].astype(jnp.float32)

    inv_n = jnp.float32(1.0 / hw)
    inv_nm1 = jnp.float32(1.0 / (hw - 1))  # torch.std is unbiased (ddof=1)

    x_mean = jnp.sum(x, axis=-1, keepdims=True) * inv_n
    y_mean = jnp.sum(y, axis=-1, keepdims=True) * inv_n

    # x is centered anyway (the centered tile is reused for the output), so
    # keep the exact two-pass variance for x.  y never needs a centered tile:
    # use E[y^2] - n*mean^2 (ddof=1 corrected), clamped at 0.  f32 accumulation
    # keeps the cancellation error negligible for realistic feature stats.
    xc = x - x_mean
    x_var = jnp.sum(xc * xc, axis=-1, keepdims=True) * inv_nm1
    y_sq = jnp.sum(y * y, axis=-1, keepdims=True)
    y_var = jnp.maximum(y_sq - jnp.float32(hw) * y_mean * y_mean, 0.0) * inv_nm1

    # Fold the whole AdaIN transform into per-row scalars (eps added to the
    # std, matching torch), then a single full-tile FMA.
    scale = jnp.sqrt(y_var) / (jnp.sqrt(x_var) + jnp.float32(eps))
    o_ref[...] = (xc * scale + y_mean).astype(o_ref.dtype)


# ----------------------------------------------------------------------------
# Two-pass fallback for huge H*W: (1) hw-tiled per-row sums, (2) affine apply.
# ----------------------------------------------------------------------------
def _stats_kernel(x_ref, y_ref, sx_ref, sxx_ref, sy_ref, syy_ref,
                  *, hw: int, tile_hw: int):
    k = pl.program_id(1)

    @pl.when(k == 0)
    def _():
        sx_ref[...] = jnp.zeros_like(sx_ref)
        sxx_ref[...] = jnp.zeros_like(sxx_ref)
        sy_ref[...] = jnp.zeros_like(sy_ref)
        syy_ref[...] = jnp.zeros_like(syy_ref)

    x = x_ref[...].astype(jnp.float32)
    y = y_ref[...].astype(jnp.float32)
    if hw % tile_hw != 0:  # static branch: only ragged tails need masking
        col = jax.lax.broadcasted_iota(jnp.int32, x.shape, 1) + k * tile_hw
        valid = col < hw
        x = jnp.where(valid, x, 0.0)
        y = jnp.where(valid, y, 0.0)

    sx_ref[...] += jnp.sum(x, axis=-1, keepdims=True)
    sxx_ref[...] += jnp.sum(x * x, axis=-1, keepdims=True)
    sy_ref[...] += jnp.sum(y, axis=-1, keepdims=True)
    syy_ref[...] += jnp.sum(y * y, axis=-1, keepdims=True)


def _apply_kernel(x_ref, scale_ref, shift_ref, o_ref):
    o_ref[...] = (x_ref[...].astype(jnp.float32) * scale_ref[...]
                  + shift_ref[...]).astype(o_ref.dtype)


# ----------------------------------------------------------------------------
# Hardware queries (best-effort; conservative fallbacks never break compile).
# ----------------------------------------------------------------------------
def _vmem_capacity_bytes() -> int:
    try:
        return int(pltpu.get_tpu_info().vmem_capacity_bytes)
    except Exception:
        return 64 * 1024 * 1024  # conservative: v7x per-TC VMEM


def _num_tensorcores(vmem_cap: int) -> int:
    try:
        dev = jax.devices()[0]
        for attr in ("num_cores", "core_count"):
            v = getattr(dev, attr, None)
            if isinstance(v, int) and v > 0:
                return v
    except Exception:
        pass
    # v7x: 64 MiB VMEM per TensorCore, 2 TCs per chip.
    return 2 if vmem_cap <= 64 * 1024 * 1024 else 1


# ----------------------------------------------------------------------------
# Wrappers
# ----------------------------------------------------------------------------
def _adain_two_pass(x2, y2, *, rows, hw, eps, sublane, elem_bytes,
                    vmem_cap, target_block_bytes):
    tile_rows = sublane
    tile_hw = max(128, _round_down(target_block_bytes // (tile_rows * elem_bytes), 128))
    tile_hw = min(tile_hw, _round_up(hw, 128))
    grid = (pl.cdiv(rows, tile_rows), pl.cdiv(hw, tile_hw))

    block_in = tile_rows * tile_hw * elem_bytes
    block_f32 = tile_rows * tile_hw * 4
    vmem_limit = int(min(vmem_cap - (2 << 20),
                         max(32 << 20, 8 * block_in + 6 * block_f32 + (4 << 20))))

    in_spec = pl.BlockSpec((tile_rows, tile_hw), lambda i, k: (i, k))
    sum_spec = pl.BlockSpec((tile_rows, 1), lambda i, k: (i, 0))
    sums_shape = jax.ShapeDtypeStruct((rows, 1), jnp.float32)

    # Pass 1: per-row sums (accumulated in the resident output blocks).
    sx, sxx, sy, syy = pl.pallas_call(
        functools.partial(_stats_kernel, hw=hw, tile_hw=tile_hw),
        out_shape=(sums_shape,) * 4,
        grid_spec=pltpu.PrefetchScalarGridSpec(
            num_scalar_prefetch=0,
            grid=grid,
            in_specs=[in_spec, in_spec],
            out_specs=[sum_spec, sum_spec, sum_spec, sum_spec],
        ),
        compiler_params=pltpu.CompilerParams(
            dimension_semantics=("parallel", "arbitrary"),
            vmem_limit_bytes=vmem_limit,
        ),
    )(x2, y2)

    # Tiny per-row scalar math in plain JAX: fold AdaIN into scale/shift.
    inv_n = jnp.float32(1.0 / hw)
    inv_nm1 = jnp.float32(1.0 / (hw - 1))
    x_mean = sx * inv_n
    y_mean = sy * inv_n
    x_var = jnp.maximum(sxx - hw * x_mean * x_mean, 0.0) * inv_nm1
    y_var = jnp.maximum(syy - hw * y_mean * y_mean, 0.0) * inv_nm1
    scale = jnp.sqrt(y_var) / (jnp.sqrt(x_var) + jnp.float32(eps))
    shift = y_mean - x_mean * scale

    # Pass 2: apply the per-row affine transform.
    return pl.pallas_call(
        _apply_kernel,
        out_shape=jax.ShapeDtypeStruct((rows, hw), x2.dtype),
        grid_spec=pltpu.PrefetchScalarGridSpec(
            num_scalar_prefetch=0,
            grid=grid,
            in_specs=[in_spec,
                      pl.BlockSpec((tile_rows, 1), lambda i, k: (i, 0)),
                      pl.BlockSpec((tile_rows, 1), lambda i, k: (i, 0))],
            out_specs=pl.BlockSpec((tile_rows, tile_hw), lambda i, k: (i, k)),
        ),
        compiler_params=pltpu.CompilerParams(
            dimension_semantics=("parallel", "parallel"),
            vmem_limit_bytes=vmem_limit,
        ),
    )(x2, scale, shift)


def adain(x: jax.Array, y: jax.Array, eps: float = 1e-5, *,
          block_bytes_override: int | None = None) -> jax.Array:
    """AdaIN forward. x, y: (N, C, H, W) with identical shapes."""
    assert x.shape == y.shape, "x and y must have the same shape"
    n, c, h, w = x.shape
    rows, hw = n * c, h * w
    assert hw > 1, "AdaIN requires H*W > 1 (unbiased std divides by H*W - 1)"

    dtype = x.dtype
    elem_bytes = jnp.dtype(dtype).itemsize
    sublane = max(8, 32 // elem_bytes)  # 8 for f32, 16 for bf16, 32 for int8/fp8

    vmem_cap = _vmem_capacity_bytes()
    num_tc = _num_tensorcores(vmem_cap)

    # Generation-aware budgets: ~96 MiB usable on 128-MiB parts, ~48 MiB on
    # v7x; target 8 MiB / 4 MiB input blocks respectively.
    budget = min(int(0.75 * vmem_cap), vmem_cap - (8 << 20))
    target_block_bytes = (8 << 20) if vmem_cap > (96 << 20) else (4 << 20)
    if block_bytes_override is not None:
        target_block_bytes = int(block_bytes_override)

    # VMEM accounting uses the lane-padded physical row width and counts the
    # f32 in-kernel temporaries (important for sub-32-bit inputs).
    hw_phys = _round_up(hw, 128)
    row_in_bytes = hw_phys * elem_bytes
    row_f32_bytes = hw_phys * 4
    per_row_cost = 6 * row_in_bytes + 5 * row_f32_bytes  # 3 arrays x 2 bufs + temps

    x2 = x.reshape(rows, hw)
    y2 = y.reshape(rows, hw)

    tile_rows = min(budget // per_row_cost,
                    max(target_block_bytes // row_in_bytes, 1),
                    _round_up(rows, sublane))
    tile_rows = _round_down(tile_rows, sublane)

    if tile_rows < sublane:
        # Even a sublane-high whole-row block overflows the VMEM budget:
        # hw-tiled two-pass fallback (stats pass + apply pass).
        out2 = _adain_two_pass(x2, y2, rows=rows, hw=hw, eps=eps,
                               sublane=sublane, elem_bytes=elem_bytes,
                               vmem_cap=vmem_cap,
                               target_block_bytes=target_block_bytes)
    else:
        # Megacore: aim for >= 2 grid steps per TensorCore so every core keeps
        # double-buffering; never force a split on single-TC chips.
        min_steps = 2 * num_tc if num_tc > 1 else 1
        if min_steps > 1 and rows >= min_steps * sublane:
            cap = max(_round_down(pl.cdiv(rows, min_steps), sublane), sublane)
            tile_rows = min(tile_rows, cap)

        grid = (pl.cdiv(rows, tile_rows),)
        block_in = tile_rows * row_in_bytes
        block_f32 = tile_rows * row_f32_bytes
        vmem_limit = int(min(vmem_cap - (2 << 20),
                             max(32 << 20, 6 * block_in + 6 * block_f32 + (4 << 20))))

        try:
            cost = pl.CostEstimate(flops=10 * rows * hw,
                                   transcendentals=4 * rows,
                                   bytes_accessed=3 * rows * hw * elem_bytes)
        except Exception:
            cost = None

        out2 = pl.pallas_call(
            functools.partial(_adain_rows_kernel, eps=eps, hw=hw),
            out_shape=jax.ShapeDtypeStruct((rows, hw), dtype),
            grid_spec=pltpu.PrefetchScalarGridSpec(
                num_scalar_prefetch=0,
                grid=grid,
                # Last dim == full H*W -> exempt from the 128 rule; no padding,
                # no output slice, boundary row blocks clipped by Pallas.
                in_specs=[pl.BlockSpec((tile_rows, hw), lambda i: (i, 0)),
                          pl.BlockSpec((tile_rows, hw), lambda i: (i, 0))],
                out_specs=pl.BlockSpec((tile_rows, hw), lambda i: (i, 0)),
            ),
            compiler_params=pltpu.CompilerParams(
                dimension_semantics=("parallel",),
                vmem_limit_bytes=vmem_limit,
            ),
            cost_estimate=cost,
        )(x2, y2)

    return out2.reshape(n, c, h, w)


def _adain_ref(x, y, eps=1e-5):
    # Pure-JAX reference matching torch semantics (unbiased std, eps on std).
    def stats(t):
        m = jnp.mean(t, axis=(2, 3), keepdims=True)
        v = jnp.sum((t - m) ** 2, axis=(2, 3), keepdims=True) / (
            t.shape[2] * t.shape[3] - 1)
        return m, jnp.sqrt(v)

    xm, xs = stats(x)
    ym, ys = stats(y)
    return (x - xm) / (xs + eps) * ys + ym


if __name__ == "__main__":
    key = jax.random.PRNGKey(0)
    kx, ky = jax.random.split(key)
    N, C, H, W = 2, 4, 16, 16
    x = jax.random.normal(kx, (N, C, H, W), dtype=jnp.float32)
    y = 2.0 * jax.random.normal(ky, (N, C, H, W), dtype=jnp.float32) + 1.0

    ref = _adain_ref(x, y)

    # Main single-pass path.
    out = jax.block_until_ready(adain(x, y))
    assert out.shape == (N, C, H, W)
    assert jnp.allclose(out, ref, atol=1e-4, rtol=1e-4), "single-pass mismatch"

    # Force the hw-tiled two-pass fallback (large-H*W path) with a tiny block
    # budget so it is exercised and checked too.
    out2 = jax.block_until_ready(adain(x, y, block_bytes_override=2048))
    assert jnp.allclose(out2, ref, atol=1e-4, rtol=1e-4), "two-pass mismatch"

    print("KERNEL_OK")
</pallas_src>

<mosaic_0001>
module attributes {stable_mosaic.version = 11 : i64} {
  func.func @_adain_rows_kernel(%arg0: i32, %arg1: memref<8x256xf32, #tpu.memory_space<vmem>>, %arg2: memref<8x256xf32, #tpu.memory_space<vmem>>, %arg3: memref<8x256xf32, #tpu.memory_space<vmem>>) attributes {dimension_semantics = [#tpu.dimension_semantics<parallel>], iteration_bounds = array<i64: 1>, scalar_prefetch = 0 : i64, scratch_operands = 0 : i64, tpu.core_type = #tpu.core_type<tc>, window_params = [{transform_indices = @transform_0, window_bounds = array<i64: 8, 256>}, {transform_indices = @transform_1, window_bounds = array<i64: 8, 256>}, {transform_indices = @transform_2, window_bounds = array<i64: 8, 256>}]} {
    %c0 = arith.constant 0 : index
    %c0_0 = arith.constant 0 : index
    %0 = vector.load %arg1[%c0, %c0_0] : memref<8x256xf32, #tpu.memory_space<vmem>>, vector<8x256xf32>
    %c0_1 = arith.constant 0 : index
    %c0_2 = arith.constant 0 : index
    %1 = vector.load %arg2[%c0_1, %c0_2] : memref<8x256xf32, #tpu.memory_space<vmem>>, vector<8x256xf32>
    %cst = arith.constant dense<0.000000e+00> : vector<8xf32>
    %2 = vector.multi_reduction <add>, %0, %cst [1] : vector<8x256xf32> to vector<8xf32>
    %3 = vector.shape_cast %2 : vector<8xf32> to vector<8x1xf32>
    %cst_3 = arith.constant 3.906250e-03 : f32
    %4 = vector.broadcast %cst_3 : f32 to vector<8x1xf32>
    %5 = arith.mulf %3, %4 : vector<8x1xf32>
    %cst_4 = arith.constant dense<0.000000e+00> : vector<8xf32>
    %6 = vector.multi_reduction <add>, %1, %cst_4 [1] : vector<8x256xf32> to vector<8xf32>
    %7 = vector.shape_cast %6 : vector<8xf32> to vector<8x1xf32>
    %cst_5 = arith.constant 3.906250e-03 : f32
    %8 = vector.broadcast %cst_5 : f32 to vector<8x1xf32>
    %9 = arith.mulf %7, %8 : vector<8x1xf32>
    %10 = vector.broadcast %5 : vector<8x1xf32> to vector<8x256xf32>
    %11 = arith.subf %0, %10 : vector<8x256xf32>
    %12 = arith.mulf %11, %11 : vector<8x256xf32>
    %cst_6 = arith.constant dense<0.000000e+00> : vector<8xf32>
    %13 = vector.multi_reduction <add>, %12, %cst_6 [1] : vector<8x256xf32> to vector<8xf32>
    %14 = vector.shape_cast %13 : vector<8xf32> to vector<8x1xf32>
    %cst_7 = arith.constant 0.00392156886 : f32
    %15 = vector.broadcast %cst_7 : f32 to vector<8x1xf32>
    %16 = arith.mulf %14, %15 : vector<8x1xf32>
    %17 = arith.mulf %1, %1 : vector<8x256xf32>
    %cst_8 = arith.constant dense<0.000000e+00> : vector<8xf32>
    %18 = vector.multi_reduction <add>, %17, %cst_8 [1] : vector<8x256xf32> to vector<8xf32>
    %19 = vector.shape_cast %18 : vector<8xf32> to vector<8x1xf32>
    %cst_9 = arith.constant 2.560000e+02 : f32
    %20 = vector.broadcast %cst_9 : f32 to vector<8x1xf32>
    %21 = arith.mulf %20, %9 : vector<8x1xf32>
    %22 = arith.mulf %21, %9 : vector<8x1xf32>
    %23 = arith.subf %19, %22 : vector<8x1xf32>
    %cst_10 = arith.constant 0.000000e+00 : f32
    %24 = vector.broadcast %cst_10 : f32 to vector<8x1xf32>
    %25 = arith.maximumf %23, %24 : vector<8x1xf32>
    %cst_11 = arith.constant 0.00392156886 : f32
    %26 = vector.broadcast %cst_11 : f32 to vector<8x1xf32>
    %27 = arith.mulf %25, %26 : vector<8x1xf32>
    %28 = math.sqrt %27 : vector<8x1xf32>
    %29 = math.sqrt %16 : vector<8x1xf32>
    %cst_12 = arith.constant 9.99999974E-6 : f32
    %30 = vector.broadcast %cst_12 : f32 to vector<8x1xf32>
    %31 = arith.addf %29, %30 : vector<8x1xf32>
    %32 = arith.divf %28, %31 : vector<8x1xf32>
    %33 = vector.broadcast %32 : vector<8x1xf32> to vector<8x256xf32>
    %34 = arith.mulf %11, %33 : vector<8x256xf32>
    %35 = vector.broadcast %9 : vector<8x1xf32> to vector<8x256xf32>
    %36 = arith.addf %34, %35 : vector<8x256xf32>
    %c0_13 = arith.constant 0 : index
    %c0_14 = arith.constant 0 : index
    %37 = vector.load %arg3[%c0_13, %c0_14] : memref<8x256xf32, #tpu.memory_space<vmem>>, vector<8x256xf32>
    tpu.vector_store %arg3[%c0_13, %c0_14], %36 {strides = array<i32>} : memref<8x256xf32, #tpu.memory_space<vmem>>, vector<8x256xf32>,
    return
  }
  func.func @transform_0(%arg0: i32) -> (i32, i32) {
    %c0_i32 = arith.constant 0 : i32
    %c0_i32_0 = arith.constant 0 : i32
    return %arg0, %c0_i32 : i32, i32
  }
  func.func @transform_1(%arg0: i32) -> (i32, i32) {
    %c0_i32 = arith.constant 0 : i32
    %c0_i32_0 = arith.constant 0 : i32
    return %arg0, %c0_i32 : i32, i32
  }
  func.func @transform_2(%arg0: i32) -> (i32, i32) {
    %c0_i32 = arith.constant 0 : i32
    %c0_i32_0 = arith.constant 0 : i32
    return %arg0, %c0_i32 : i32, i32
  }
}

</mosaic_0001>

<bundles_post_ra>
// kernel: tpu_custom_call.1
= control target key start
LH: loop header
LB: loop body
LE: loop exit
PB: predicated region body
PF: predicated region fallthrough
CT: control target
= control target key end

     0   :  { %7 = vsyncpa [#allocation3], 0  ;;  %s240_s0 = inlined_call_operand.hbm [shape: f32[8,256], index: 0, kind: input, shape index: {}]   ;;  %s241_s1 = inlined_call_operand.hbm [shape: f32[8,256], index: 1, kind: input, shape index: {}]   ;;  %s242_s2 = inlined_call_operand.hbm [shape: f32[8,256], index: 2, kind: output, shape index: {}]  }
   0x1   :  { %8 = vsyncpa [#allocation6], 0 }
   0x2   :  { %9 = vsyncpa [#allocation4], 0  ;;  %s186_s9 = smov [#allocation2]   ;;  %s187_s11 = smov [#allocation5]  }
   0x3   :  { %s16_s10 = sshll.u32 %s186_s9, 4  ;;  %s26_s12 = sshll.u32 %s187_s11, 4  ;;  %s17_s10 = int_to_ptr.vmem [resolvable:$true] %s16_s10  ;;  %s27_s12 = int_to_ptr.vmem [resolvable:$true] %s26_s12 }
   0x4   :  { %s114_s15 = scalar_lea.hbm %s240_s0, 256 }
   0x5   :  { %p115_p0 = scmp.ne.s32.totalorder %s240_s0, %s114_s15  ;;  %p118_p1 = scmp.lt.u32.totalorder %s114_s15, %s240_s0 }
   0x7   :  { %p120_p2 = pnand %p118_p1, %p115_p0 }
   0x9   :  { %123 = shalt.err (!%p120_p2)
}
   0xa   :  { %s124_s20 = scalar_lea.vmem %s17_s10, 256  ;;  %p129_p4 = scmp.lt.s32.totalorder %s17_s10, %s17_s10 }
   0xb   :  { %p125_p3 = scmp.ne.s32.totalorder %s17_s10, %s124_s20  ;;  %p130_p5 = scmp.lt.s32.totalorder %s124_s20, %s124_s20 }
   0xd   :  { %p131_p6 = por %p130_p5, %p129_p4 }
   0xf   :  { %p132_p7 = pnand %p131_p6, %p125_p3 }
  0x11   :  { %135 = shalt.err (!%p132_p7)
}
  0x12   :  { %19 = dma.hbm_to_vmem [thread:$0]  %s240_s0, 256, %s17_s10, [#allocation3]  }
  0x13   :  { %s136_s25 = scalar_lea.hbm %s241_s1, 256 }
  0x14   :  { %p137_p8 = scmp.ne.s32.totalorder %s241_s1, %s136_s25  ;;  %p140_p9 = scmp.lt.u32.totalorder %s136_s25, %s241_s1 }
  0x16   :  { %p142_p10 = pnand %p140_p9, %p137_p8 }
  0x18   :  { %145 = shalt.err (!%p142_p10)
}
  0x19   :  { %s146_s30 = scalar_lea.vmem %s27_s12, 256  ;;  %p151_p12 = scmp.lt.s32.totalorder %s27_s12, %s27_s12 }
  0x1a   :  { %p147_p11 = scmp.ne.s32.totalorder %s27_s12, %s146_s30  ;;  %p152_p13 = scmp.lt.s32.totalorder %s146_s30, %s146_s30 }
  0x1c   :  { %p153_p0 = por %p152_p13, %p151_p12 }
  0x1e   :  { %p154_p1 = pnand %p153_p0, %p147_p11 }
  0x20   :  { %157 = shalt.err (!%p154_p1)
}
  0x21   :  { %29 = dma.hbm_to_vmem [thread:$0]  %s241_s1, 256, %s27_s12, [#allocation6]  }
  0x22   :  { %180 = dma.done.wait [#allocation3], 256  }
  0x23   :  { %181 = vsyncadd [#allocation3], 4294967040 }
  0x24   :  { %182 = dma.done.wait [#allocation6], 256  }
  0x25   :  { %183 = vsyncadd [#allocation6], 4294967040  ;;  %v36_v0 = vld [vmem:[#allocation2] sm:$0xff]  ;;  %v37_v1 = vld [vmem:[#allocation2 + $0x8] sm:$0xff]  ;;  %s188_s1 = smov [#allocation7]  }
  0x26   :  { %v38_v2 = vld [vmem:[#allocation5] sm:$0xff]  ;;  %v40_v3 = vadd.f32 %v37_v1, %v36_v0  ;;  %v39_v4 = vld [vmem:[#allocation5 + $0x8] sm:$0xff]  ;;  %s95_s4 = sshll.u32 %s188_s1, 4  ;;  %s96_s4 = int_to_ptr.vmem [resolvable:$true] %s95_s4 }
  0x27   :  { %v44_v5 = vadd.f32 %v39_v4, %v38_v2  ;;  %v56_v6 = vmul.f32 %v38_v2, %v38_v2  ;;  %v57_v7 = vmul.f32 %v39_v4, %v39_v4  ;;  %s158_s5 = scalar_lea.vmem %s96_s4, 256  ;;  %p163_p3 = scmp.lt.s32.totalorder %s96_s4, %s96_s4 }
  0x28   :  { %41 = vadd.xlane.f32.xlu0 %v40_v3  ;;  %p159_p2 = scmp.ne.s32.totalorder %s96_s4, %s158_s5  ;;  %p164_p4 = scmp.lt.s32.totalorder %s158_s5, %s158_s5 }
  0x29   :  { %45 = vadd.xlane.f32.xlu1 %v44_v5  ;;  %v58_v8 = vadd.f32 %v57_v7, %v56_v6 }
  0x2a   :  { %p165_p5 = por %p164_p4, %p163_p3 }
  0x2c   :  { %p166_p6 = pnand %p165_p5, %p159_p2 }
  0x2d   :  { %59 = vadd.xlane.f32.xlu1 %v58_v8 }
  0xb5   :  { %v42_v9 = vpop.xlane.xlu0 %41 }
  0xb6   :  { %v43_v10 = vmul.f32 0.00390625, %v42_v9  ;;  %v46_v16 = vpop.xlane.xlu1 %45 }
  0xb7   :  { %v47_v17 = vmul.f32 0.00390625, %v46_v16 }
  0xb8   :  { %v48_v11 = vsub.f32 %v36_v0, %v43_v10  ;;  %v49_v12 = vsub.f32 %v37_v1, %v43_v10 }
  0xb9   :  { %v61_v18 = vmul.f32 256.0, %v47_v17 }
  0xba   :  { %v50_v13 = vmul.f32 %v48_v11, %v48_v11  ;;  %v51_v14 = vmul.f32 %v49_v12, %v49_v12  ;;  %v60_v20 = vpop.xlane.xlu1 %59 }
  0xbb   :  { %v62_v19 = vmul.f32 %v61_v18, %v47_v17 }
  0xbc   :  { %v52_v15 = vadd.f32 %v51_v14, %v50_v13 }
  0xbd   :  { %v63_v21 = vsub.f32 %v60_v20, %v62_v19 }
  0xbe   :  { %53 = vadd.xlane.f32.xlu0 %v52_v15 }
  0xbf   :  { %v64_v24 = vmax.f32 %v63_v21, 0.0 }
  0xc1   :  { %v65_v25 = vmul.f32 0.003921569, %v64_v24 }
  0xc3   :  { %vm68_vm2 = vcmp.eq.f32.partialorder %v65_v25, inf  ;;  %v71_v34 = vand.u32 2147483648, %v65_v25  ;;  %vm70_vm3 = vcmp.eq.f32.partialorder %v65_v25, 0.0 }
 0x14b   :  { %v54_v22 = vpop.xlane.xlu0 %53 }
 0x14c   :  { %v55_v23 = vmul.f32 0.003921569, %v54_v22 }
 0x14e   :  { %108 = vrsqrt.f32 %v55_v23  ;;  %vm75_vm0 = vcmp.eq.f32.partialorder %v55_v23, inf  ;;  %v78_v28 = vand.u32 2147483648, %v55_v23  ;;  %vm77_vm1 = vcmp.eq.f32.partialorder %v55_v23, 0.0 }
 0x14f   :  { %110 = vrsqrt.f32 %v65_v25 }
 0x158   :  { %v109_v26 = vpop.eup %108 }
 0x159   :  { %v74_v27 = vmul.f32 %v109_v26, %v55_v23  ;;  %v111_v32 = vpop.eup %110 }
 0x15a   :  { %v67_v33 = vmul.f32 %v111_v32, %v65_v25 }
 0x15b   :  { %v76_v29 = vsel %vm75_vm0, %v55_v23, %v74_v27 }
 0x15c   :  { %v79_v30 = vsel %vm77_vm1, %v78_v28, %v76_v29  ;;  %v69_v35 = vsel %vm68_vm2, %v65_v25, %v67_v33 }
 0x15d   :  { %v80_v31 = vadd.f32 1e-05, %v79_v30  ;;  %v72_v37 = vsel %vm70_vm3, %v71_v34, %v69_v35 }
 0x15f   :  { %112 = vrcp.f32 %v80_v31 }
 0x169   :  { %v113_v36 = vpop.eup %112 }
 0x16a   :  { %v82_v38 = vmul.f32 %v113_v36, %v72_v37 }
 0x16c   :  { %v83_v39 = vmul.f32 %v82_v38, %v48_v11  ;;  %v84_v40 = vmul.f32 %v82_v38, %v49_v12 }
 0x16e   :  { %v85_v41 = vadd.f32 %v83_v39, %v47_v17  ;;  %v86_v42 = vadd.f32 %v84_v40, %v47_v17 }
 0x170   :  { %87 = vst [vmem:[#allocation7] sm:$0xff] %v85_v41  ;;  %88 = vst [vmem:[#allocation7 + $0x8] sm:$0xff] %v86_v42 }
 0x171   :  { %169 = shalt.err (!%p166_p6)
}
 0x172   :  { %s170_s8 = scalar_lea.hbm %s242_s2, 256 }
 0x173   :  { %p171_p7 = scmp.ne.s32.totalorder %s242_s2, %s170_s8  ;;  %p174_p8 = scmp.lt.u32.totalorder %s170_s8, %s242_s2 }
 0x175   :  { %p176_p9 = pnand %p174_p8, %p171_p7 }
 0x177   :  { %179 = shalt.err (!%p176_p9)
}
 0x178   :  { %98 = dma.vmem_to_hbm [thread:$0]  %s96_s4, 256, %s242_s2, [#allocation4]  }
 0x179   :  { %184 = dma.done.wait [#allocation4], 256  }
 0x17a   :  { %185 = vsyncadd [#allocation4], 4294967040 }
 0x17b   :  { %102 = vsyncpa [#allocation3], 1 }
 0x17c   :  { %103 = vsyncpa [#allocation6], 1 }
 0x17d   :  { %104 = vsyncpa [#allocation4], 1 }

</bundles_post_ra>
